<compile_context>
chip_gen: v7x
topology: tpu7x:2x2x1
jax: 0.10.0
libtpu: 0.0.40
codegen_flags: <defaults>
</compile_context>

<pallas_src>
import functools

import jax
import jax.numpy as jnp
from jax.experimental import pallas as pl
from jax.experimental.pallas import tpu as pltpu

_LANE = 128
_BF16_TILE_ROWS = 16  # bf16 packs 16 rows per sublane group -> align batch tiles to 16


def _round_up(n: int, m: int) -> int:
    return ((n + m - 1) // m) * m


# ---------------------------------------------------------------------------
# One-time parameter prep (init-time, not per forward call)
# ---------------------------------------------------------------------------
def prepare_classifier_params(weight, bias, compute_dtype=jnp.bfloat16):
    """weight: [num_classes, input_dim] (PyTorch layout), bias: [num_classes].

    Returns (wt [K, Np] compute_dtype, bias [1, Np] float32) with N zero-padded
    to a lane-dense multiple (256 for larger heads, 128 for tiny ones). K is NOT
    padded (the kernel takes the full K extent as one block dim).
    """
    num_classes, input_dim = weight.shape
    n_quant = 256 if num_classes > 128 else 128
    n_pad = _round_up(num_classes, n_quant)

    wt = jnp.zeros((input_dim, n_pad), dtype=compute_dtype)
    wt = wt.at[:, :num_classes].set(weight.T.astype(compute_dtype))

    b = jnp.zeros((1, n_pad), dtype=jnp.float32)
    b = b.at[0, :num_classes].set(bias.astype(jnp.float32))
    return wt, b


# ---------------------------------------------------------------------------
# Classifier: out = x @ W.T + b
# ---------------------------------------------------------------------------
def _linear_kernel(x_ref, wt_ref, b_ref, o_ref):
    # x_ref : (TM, K)  input dtype (cast fused here -> no extra HBM pass)
    # wt_ref: (K, TN)  bf16, pre-transposed / N-padded
    # b_ref : (1, TN)  f32
    # o_ref : (TM, TN)
    x = x_ref[...].astype(wt_ref.dtype)
    acc = jnp.dot(x, wt_ref[...], preferred_element_type=jnp.float32)
    o_ref[...] = (acc + b_ref[...]).astype(o_ref.dtype)


def classifier_forward(x, wt_padded, bias_padded, *, block_b=512, block_n=2048,
                       out_dtype=None):
    """x: [B, input_dim]. Returns [B, Np] lane-padded logits (padding cols are 0).

    Pass out_dtype=jnp.bfloat16 to halve logit writeback bytes when downstream
    (softmax / loss) tolerates it.
    """
    B, K = x.shape
    Kw, Np = wt_padded.shape
    assert Kw == K, f"weight K ({Kw}) != activation K ({K})"
    out_dtype = x.dtype if out_dtype is None else out_dtype

    # Batch tile: multiple of 16 (bf16 row packing), capped by block_b.
    TM = min(block_b, _round_up(B, _BF16_TILE_ROWS))
    if B >= 2 * _BF16_TILE_ROWS:
        # Keep at least 2 batch steps so v7x can shard the parallel axis across
        # both TensorCores (and the pipeline actually overlaps DMA/compute).
        TM = min(TM, _round_up(pl.cdiv(B, 2), _BF16_TILE_ROWS))
    # N tile: bounds the double-buffered weight block in VMEM for large heads.
    TN = min(block_n, Np)

    grid = (pl.cdiv(B, TM), pl.cdiv(Np, TN))

    return pl.pallas_call(
        _linear_kernel,
        out_shape=jax.ShapeDtypeStruct((B, Np), out_dtype),
        grid=grid,
        in_specs=[
            pl.BlockSpec((TM, K), lambda i, j: (i, 0)),   # activations, batch-tiled
            pl.BlockSpec((K, TN), lambda i, j: (0, j)),   # weight, N-tiled
            pl.BlockSpec((1, TN), lambda i, j: (0, j)),   # bias row
        ],
        out_specs=pl.BlockSpec((TM, TN), lambda i, j: (i, j)),
        compiler_params=pltpu.CompilerParams(
            dimension_semantics=("parallel", "parallel"),
        ),
    )(x, wt_padded, bias_padded)


# ---------------------------------------------------------------------------
# Fused GlobalAveragePooling(dim=1) + Classifier head:
#   out = mean_tokens(x) @ W.T + b,  x: [B, S, C]
# ---------------------------------------------------------------------------
def _pool_linear_kernel(x_ref, wt_ref, b_ref, o_ref, pool_acc, *, inv_s):
    # x_ref   : (TM, TS, C)  features
    # wt_ref  : (C, Np)      bf16
    # b_ref   : (1, Np)      f32
    # o_ref   : (TM, Np)
    # pool_acc: (TM, C)      f32 scratch (per-batch pooled sum, resident over tokens)
    t = pl.program_id(1)

    @pl.when(t == 0)
    def _():
        pool_acc[...] = jnp.zeros_like(pool_acc)

    pool_acc[...] += jnp.sum(x_ref[...].astype(jnp.float32), axis=1)

    @pl.when(t == pl.num_programs(1) - 1)
    def _():
        pooled = (pool_acc[...] * inv_s).astype(wt_ref.dtype)
        acc = jnp.dot(pooled, wt_ref[...], preferred_element_type=jnp.float32)
        o_ref[...] = (acc + b_ref[...]).astype(o_ref.dtype)


def pooled_classifier_forward(x, wt_padded, bias_padded, *, block_b=256,
                              block_s=512, out_dtype=None):
    """x: [B, S, C]. Returns [B, Np] lane-padded logits of mean(x, axis=1) @ W.T + b."""
    B, S, C = x.shape
    Kw, Np = wt_padded.shape
    assert Kw == C, f"weight K ({Kw}) != feature dim ({C})"
    out_dtype = x.dtype if out_dtype is None else out_dtype

    TM = min(block_b, _round_up(B, _BF16_TILE_ROWS))
    # Token tile must divide S exactly so no out-of-bounds rows leak into the sum.
    TS = block_s if (S > block_s and S % block_s == 0) else S
    # TODO(synk): masked token tiling for S not a multiple of block_s, and an N grid
    # axis (as in classifier_forward) for very large num_classes.

    grid = (pl.cdiv(B, TM), S // TS)
    kernel = functools.partial(_pool_linear_kernel, inv_s=1.0 / S)

    return pl.pallas_call(
        kernel,
        out_shape=jax.ShapeDtypeStruct((B, Np), out_dtype),
        grid=grid,
        in_specs=[
            pl.BlockSpec((TM, TS, C), lambda i, t: (i, t, 0)),  # features
            pl.BlockSpec((C, Np), lambda i, t: (0, 0)),         # weight (fetched once)
            pl.BlockSpec((1, Np), lambda i, t: (0, 0)),         # bias row
        ],
        out_specs=pl.BlockSpec((TM, Np), lambda i, t: (i, 0)),
        scratch_shapes=[pltpu.VMEM((TM, C), jnp.float32)],
        compiler_params=pltpu.CompilerParams(
            dimension_semantics=("parallel", "arbitrary"),
        ),
    )(x, wt_padded, bias_padded)


# ---------------------------------------------------------------------------
# Demo / correctness check
# ---------------------------------------------------------------------------
if __name__ == "__main__":
    key = jax.random.PRNGKey(0)
    kx, kb, kw, kx3 = jax.random.split(key, 4)

    # ---- Classifier alone: forward(x) = x @ W.T + b ----
    batch, input_dim, num_classes = 8, 32, 16
    x = jax.random.normal(kx, (batch, input_dim), dtype=jnp.float32)

    # Parameter init mirrors the PyTorch module:
    #   weight: zeros (nn.init.zeros_)
    #   bias:   uniform(-1/sqrt(input_dim), 1/sqrt(input_dim)) (nn.Linear default)
    weight = jnp.zeros((num_classes, input_dim), dtype=jnp.float32)
    bound = 1.0 / (input_dim ** 0.5)
    bias = jax.random.uniform(kb, (num_classes,), minval=-bound, maxval=bound,
                              dtype=jnp.float32)

    wt_p, b_p = prepare_classifier_params(weight, bias)
    out = jax.block_until_ready(classifier_forward(x, wt_p, b_p))
    logits = out[:, :num_classes]           # slice only because the test compares the narrow view
    ref = x @ weight.T + bias
    assert logits.shape == (batch, num_classes)
    assert jnp.allclose(logits, ref, atol=1e-5, rtol=1e-5)
    # padded logit columns are exact zeros (zero weight + zero bias pad)
    assert jnp.all(out[:, num_classes:] == 0)

    # Non-trivial weight so the bf16 MXU path is actually exercised.
    w2 = jax.random.normal(kw, (num_classes, input_dim), dtype=jnp.float32) * 0.1
    wt2_p, b2_p = prepare_classifier_params(w2, bias)
    out2 = jax.block_until_ready(classifier_forward(x, wt2_p, b2_p))
    ref2 = x @ w2.T + bias
    assert jnp.allclose(out2[:, :num_classes], ref2, atol=5e-2, rtol=5e-2)

    # ---- Fused GlobalAveragePooling(dim=1) + Classifier head ----
    B, S, C = 2, 16, 32
    x3 = jax.random.normal(kx3, (B, S, C), dtype=jnp.float32)
    w3 = jax.random.normal(kw, (num_classes, C), dtype=jnp.float32) * 0.1
    wt3_p, b3_p = prepare_classifier_params(w3, bias)
    out3 = jax.block_until_ready(
        pooled_classifier_forward(x3, wt3_p, b3_p, block_s=8))  # 2 token steps -> exercises the accumulator
    ref3 = x3.mean(axis=1) @ w3.T + bias
    assert jnp.allclose(out3[:, :num_classes], ref3, atol=5e-2, rtol=5e-2)

    print("KERNEL_OK")
</pallas_src>

<mosaic_0001>
module attributes {stable_mosaic.version = 11 : i64} {
  func.func @_linear_kernel(%arg0: i32, %arg1: i32, %arg2: memref<16x32xf32, #tpu.memory_space<vmem>>, %arg3: memref<32x128xbf16, #tpu.memory_space<vmem>>, %arg4: memref<1x128xf32, #tpu.memory_space<vmem>>, %arg5: memref<16x128xf32, #tpu.memory_space<vmem>>) attributes {dimension_semantics = [#tpu.dimension_semantics<parallel>, #tpu.dimension_semantics<parallel>], iteration_bounds = array<i64: 1, 1>, scalar_prefetch = 0 : i64, scratch_operands = 0 : i64, tpu.core_type = #tpu.core_type<tc>, window_params = [{transform_indices = @transform_0, window_bounds = array<i64: 16, 32>}, {transform_indices = @transform_1, window_bounds = array<i64: 32, 128>}, {transform_indices = @transform_2, window_bounds = array<i64: 1, 128>}, {transform_indices = @transform_3, window_bounds = array<i64: 16, 128>}]} {
    %c0 = arith.constant 0 : index
    %c0_0 = arith.constant 0 : index
    %0 = vector.load %arg2[%c0, %c0_0] : memref<16x32xf32, #tpu.memory_space<vmem>>, vector<16x32xf32>
    %1 = arith.truncf %0 : vector<16x32xf32> to vector<16x32xbf16>
    %c0_1 = arith.constant 0 : index
    %c0_2 = arith.constant 0 : index
    %2 = vector.load %arg3[%c0_1, %c0_2] : memref<32x128xbf16, #tpu.memory_space<vmem>>, vector<32x128xbf16>
    %cst = arith.constant dense<0.000000e+00> : vector<16x128xf32>
    %3 = tpu.matmul %1, %2, %cst {dimension_numbers = #tpu.dot_dimension_numbers<[1], [0], [0], [1], [0, 0, 1, 1], [], []>} : vector<16x32xbf16>, vector<32x128xbf16>, vector<16x128xf32> -> vector<16x128xf32>
    %c0_3 = arith.constant 0 : index
    %c0_4 = arith.constant 0 : index
    %4 = vector.load %arg4[%c0_3, %c0_4] : memref<1x128xf32, #tpu.memory_space<vmem>>, vector<1x128xf32>
    %5 = vector.broadcast %4 : vector<1x128xf32> to vector<16x128xf32>
    %6 = arith.addf %3, %5 : vector<16x128xf32>
    %c0_5 = arith.constant 0 : index
    %c0_6 = arith.constant 0 : index
    %7 = vector.load %arg5[%c0_5, %c0_6] : memref<16x128xf32, #tpu.memory_space<vmem>>, vector<16x128xf32>
    tpu.vector_store %arg5[%c0_5, %c0_6], %6 {strides = array<i32>} : memref<16x128xf32, #tpu.memory_space<vmem>>, vector<16x128xf32>,
    return
  }
  func.func @transform_0(%arg0: i32, %arg1: i32) -> (i32, i32) {
    %c0_i32 = arith.constant 0 : i32
    %c0_i32_0 = arith.constant 0 : i32
    return %arg0, %c0_i32 : i32, i32
  }
  func.func @transform_1(%arg0: i32, %arg1: i32) -> (i32, i32) {
    %c0_i32 = arith.constant 0 : i32
    %c0_i32_0 = arith.constant 0 : i32
    return %c0_i32, %arg1 : i32, i32
  }
  func.func @transform_2(%arg0: i32, %arg1: i32) -> (i32, i32) {
    %c0_i32 = arith.constant 0 : i32
    %c0_i32_0 = arith.constant 0 : i32
    return %c0_i32, %arg1 : i32, i32
  }
  func.func @transform_3(%arg0: i32, %arg1: i32) -> (i32, i32) {
    %c0_i32 = arith.constant 0 : i32
    return %arg0, %arg1 : i32, i32
  }
}

</mosaic_0001>

<bundles_post_ra>
// kernel: tpu_custom_call.1
= control target key start
LH: loop header
LB: loop body
LE: loop exit
PB: predicated region body
PF: predicated region fallthrough
CT: control target
= control target key end

     0   :  { %8 = vsyncpa [#allocation3], 0  ;;  %s307_s0 = inlined_call_operand.hbm [shape: f32[8,32], index: 0, kind: input, shape index: {}]   ;;  %s308_s1 = inlined_call_operand.hbm [shape: bf16[32,128], index: 1, kind: input, shape index: {}]   ;;  %s309_s2 = inlined_call_operand.vmem [shape: f32[1,128], index: 2, kind: input, shape index: {}]   ;;  %s310_s3 = inlined_call_operand.hbm [shape: f32[8,128], index: 3, kind: output, shape index: {}]  }
   0x1   :  { %9 = vsyncpa [#allocation6], 0 }
   0x2   :  { %10 = vsyncpa [#allocation4], 0 }
   0x3   :  { %15 = vsyncadd [#allocation3], 128  ;;  %s233_s12 = smov [#allocation2]   ;;  %s161_s16 = scalar_lea.hbm %s307_s0, 128 }
   0x4   :  { %s16_s13 = sshll.u32 %s233_s12, 4  ;;  %p162_p0 = scmp.ne.s32.totalorder %s307_s0, %s161_s16  ;;  %s17_s13 = int_to_ptr.vmem [resolvable:$true] %s16_s13 }
   0x5   :  { %p165_p1 = scmp.lt.u32.totalorder %s161_s16, %s307_s0 }
   0x7   :  { %p167_p2 = pnand %p165_p1, %p162_p0 }
   0x9   :  { %170 = shalt.err (!%p167_p2)
}
   0xa   :  { %s171_s21 = scalar_lea.vmem %s17_s13, 128  ;;  %s175_s22 = scalar_lea.vmem %s17_s13, 256 }
   0xb   :  { %p172_p3 = scmp.ne.s32.totalorder %s17_s13, %s171_s21  ;;  %p176_p4 = scmp.lt.s32.totalorder %s17_s13, %s17_s13 }
   0xc   :  { %p177_p5 = scmp.lt.s32.totalorder %s175_s22, %s171_s21 }
   0xe   :  { %p178_p6 = por %p177_p5, %p176_p4 }
  0x10   :  { %p179_p7 = pnand %p178_p6, %p172_p3 }
  0x12   :  { %182 = shalt.err (!%p179_p7)
}
  0x13   :  { %s234_s23 = smov 128   ;;  %s235_s24 = smov 8  }
  0x14   :  { %22 = dma.hbm_to_vmem [thread:$0]  %s307_s0, 128, %s17_s13, [#allocation3], %s234_s23, %s234_s23, %s235_s24  }
  0x15   :  { %s236_s27 = smov [#allocation5]   ;;  %s183_s4 = scalar_lea.hbm %s308_s1, 256 }
  0x16   :  { %s28_s28 = sshll.u32 %s236_s27, 4  ;;  %p184_p8 = scmp.ne.s32.totalorder %s308_s1, %s183_s4  ;;  %s29_s28 = int_to_ptr.vmem [resolvable:$true] %s28_s28 }
  0x17   :  { %p187_p9 = scmp.lt.u32.totalorder %s183_s4, %s308_s1 }
  0x19   :  { %p189_p10 = pnand %p187_p9, %p184_p8 }
  0x1b   :  { %192 = shalt.err (!%p189_p10)
}
  0x1c   :  { %s193_s9 = scalar_lea.vmem %s29_s28, 256  ;;  %p198_p12 = scmp.lt.s32.totalorder %s29_s28, %s29_s28 }
  0x1d   :  { %p194_p11 = scmp.ne.s32.totalorder %s29_s28, %s193_s9  ;;  %p199_p13 = scmp.lt.s32.totalorder %s193_s9, %s193_s9 }
  0x1f   :  { %p200_p0 = por %p199_p13, %p198_p12 }
  0x21   :  { %p201_p1 = pnand %p200_p0, %p194_p11 }
  0x23   :  { %204 = shalt.err (!%p201_p1)
}
  0x24   :  { %s237_s0 = smov 64   ;;  %s238_s10 = smov 4  }
  0x25   :  { %34 = dma.hbm_to_vmem [thread:$0]  %s308_s1, 256, %s29_s28, [#allocation6], %s237_s0, %s237_s0, %s238_s10  }
  0x26   :  { %227 = dma.done.wait [#allocation3], 256  }
  0x27   :  { %228 = vsyncadd [#allocation3], 4294967040 }
  0x28   :  { %229 = dma.done.wait [#allocation6], 256  }
  0x29   :  { %230 = vsyncadd [#allocation6], 4294967040  ;;  %v239_v0 = vmov 0.0   ;;  %vm240_vm0 = vmmov 0   ;;  %v159_v1 = vld [vmem:[#allocation5] sm:$0xff]   ;;  %v160_v2 = vld [vmem:[#allocation5 + $0x8] sm:$0xff]  }
  0x2a   :  { %142 = vmatprep.subr.bf16.mxu0 %v239_v0  ;;  %146 = vmatprep.mubr.msk.bf16.mxu0 %vm240_vm0, %v239_v0  ;;  %v44_v3 = vld [vmem:[#allocation2] sm:$0xff]  ;;  %v45_v4 = vld [vmem:[#allocation2 + $0x8] sm:$0xff]  ;;  %vm70_vm1 = vcmask 261120  }
  0x2b   :  { %143 = vmatpush3.bf16.msra.mxu0 %v159_v1  ;;  %v46_v5 = vpack.c.bf16 %v45_v4, %v44_v3  ;;  %v135_v6 = vld [vmem:[%s309_s2] ss:$0 sm:$0xff] }
  0x2c   :  { %144 = vmatprep.subr.bf16.mxu0 %v239_v0 }
  0x2f   :  { %145 = vmatpush3.bf16.msra.mxu0 %v160_v2 }
  0x32   :  { %147 = vmatmul.mubr.msk.bf16.vlgmr.msra.gmra.mrb[0].mxu0 %vm70_vm1, %v46_v5 }
 0x105   :  { %v108_v7 = vpop.f32.mrb[0].mxu0 }
 0x106   :  { %v109_v8 = vadd.f32 %v135_v6, %v108_v7  ;;  %v148_v9 = vpop.f32.mrb[1].mxu0 }
 0x107   :  { %v111_v10 = vpop.f32.mrb[2].mxu0 }
 0x108   :  { %115 = vst [vmem:[#allocation7] sm:$0xff] %v109_v8  ;;  %v112_v11 = vadd.f32 %v135_v6, %v111_v10  ;;  %v149_v12 = vpop.f32.mrb[3].mxu0 }
 0x10a   :  { %116 = vst [vmem:[#allocation7 + $0x8] sm:$0xff] %v112_v11 }
 0x10b   :  { %121 = vsyncadd [#allocation4], 128  ;;  %s241_s14 = smov [#allocation7]  }
 0x10c   :  { %s122_s15 = sshll.u32 %s241_s14, 4  ;;  %s123_s15 = int_to_ptr.vmem [resolvable:$true] %s122_s15 }
 0x10d   :  { %s205_s16 = scalar_lea.vmem %s123_s15, 128  ;;  %s209_s17 = scalar_lea.vmem %s123_s15, 256 }
 0x10e   :  { %p206_p2 = scmp.ne.s32.totalorder %s123_s15, %s205_s16  ;;  %p210_p3 = scmp.lt.s32.totalorder %s123_s15, %s123_s15 }
 0x10f   :  { %p211_p4 = scmp.lt.s32.totalorder %s209_s17, %s205_s16 }
 0x111   :  { %p212_p5 = por %p211_p4, %p210_p3 }
 0x113   :  { %p213_p6 = pnand %p212_p5, %p206_p2 }
 0x115   :  { %216 = shalt.err (!%p213_p6)
}
 0x116   :  { %s217_s19 = scalar_lea.hbm %s310_s3, 128 }
 0x117   :  { %p218_p7 = scmp.ne.s32.totalorder %s310_s3, %s217_s19  ;;  %p221_p8 = scmp.lt.u32.totalorder %s217_s19, %s310_s3 }
 0x119   :  { %p223_p9 = pnand %p221_p8, %p218_p7 }
 0x11b   :  { %226 = shalt.err (!%p223_p9)
}
 0x11c   :  { %128 = dma.vmem_to_hbm [thread:$0]  %s123_s15, 128, %s310_s3, [#allocation4], %s234_s23, %s234_s23, %s235_s24  }
 0x11d   :  { %231 = dma.done.wait [#allocation4], 256  }
 0x11e   :  { %232 = vsyncadd [#allocation4], 4294967040 }
 0x11f   :  { %132 = vsyncpa [#allocation3], 1 }
 0x120   :  { %133 = vsyncpa [#allocation6], 1 }
 0x121   :  { %134 = vsyncpa [#allocation4], 1 }

</bundles_post_ra>
